<compile_context>
chip_gen: v5e
topology: v5e:2x2
jax: 0.10.0
libtpu: 0.0.40
codegen_flags: <defaults>
</compile_context>

<pallas_src>
import jax
import jax.numpy as jnp
from jax.experimental import pallas as pl


def _identity_kernel(x_ref, o_ref):
    # Pure pass-through. The output aliases the input HBM buffer
    # (input_output_aliases={0: 0}) and both refs live in pl.ANY memory space,
    # so no DMA is issued and no bytes cross HBM. Intentionally a no-op body.
    del x_ref, o_ref


def identity(x: jax.Array) -> jax.Array:
    """Pallas identity: exact shape/dtype/value passthrough of x (zero-DMA)."""
    if x.size == 0:
        return x

    return pl.pallas_call(
        _identity_kernel,
        out_shape=jax.ShapeDtypeStruct(x.shape, x.dtype),
        in_specs=[pl.BlockSpec(memory_space=pl.ANY)],   # raw HBM ref, no auto-DMA
        out_specs=pl.BlockSpec(memory_space=pl.ANY),    # raw HBM ref, no auto-DMA
        input_output_aliases={0: 0},                    # output IS the input buffer
    )(x)


if __name__ == "__main__":
    key = jax.random.PRNGKey(0)
    x = jax.random.normal(key, (2, 4, 16, 16), dtype=jnp.float32)

    y = identity(x)
    jax.block_until_ready(y)

    assert y.shape == x.shape, (y.shape, x.shape)
    assert y.dtype == x.dtype, (y.dtype, x.dtype)
    assert jnp.array_equal(y, x), "identity mismatch"

    print("KERNEL_OK")
</pallas_src>

<mosaic_0001>
module attributes {stable_mosaic.version = 11 : i64} {
  func.func @_identity_kernel(%arg0: memref<2x4x16x16xf32, #tpu.memory_space<any>>, %arg1: memref<2x4x16x16xf32, #tpu.memory_space<any>>) attributes {dimension_semantics = [], scalar_prefetch = 0 : i64, scratch_operands = 0 : i64, tpu.core_type = #tpu.core_type<tc>} {
    return
  }
}

</mosaic_0001>

<bundles_post_ra>
// kernel: tpu_custom_call.1
= control target key start
LH: loop header
LB: loop body
LE: loop exit
PB: predicated region body
PF: predicated region fallthrough
CT: control target
= control target key end

     0   :  { %s16_s0 = inlined_call_operand.hbm [shape: f32[2,4,16,16], index: 0, kind: input, shape index: {}, may-alias: {0,1}]   ;;  %s17_s1 = inlined_call_operand.hbm [shape: f32[2,4,16,16], index: 1, kind: output, shape index: {}, may-alias: {0,1}]  }

</bundles_post_ra>
